<compile_context>
chip_gen: v6e
topology: v6e:2x2x1
jax: 0.10.0
libtpu: 0.0.40
codegen_flags: <defaults>
</compile_context>

<pallas_src>
import functools

import jax
import jax.numpy as jnp
from jax.experimental import pallas as pl
from jax.experimental.pallas import tpu as pltpu


def _focal_loss_kernel(inputs_ref, targets_ref, alpha_ref, out_ref, *, gamma):
    # Load in native dtype, compute in f32.
    x = inputs_ref[...].astype(jnp.float32)      # (TN, C) logits
    t = targets_ref[...]                         # (TN, 1) int32 class ids
    a = alpha_ref[...].astype(jnp.float32)       # (1,  C) per-class alpha

    # one-hot class mask via broadcasted iota (scatter_ equivalent, gather-free)
    col = jax.lax.broadcasted_iota(jnp.int32, x.shape, 1)
    mask = (col == t).astype(jnp.float32)        # (TN, C)

    # Fused log-softmax at the target class (logsumexp form):
    #   log_p = x_t - m - log(sum(exp(x - m)))
    m = jnp.max(x, axis=1, keepdims=True)                            # (TN, 1)
    lse = jnp.log(jnp.sum(jnp.exp(x - m), axis=1, keepdims=True))    # (TN, 1)
    x_t = jnp.sum(x * mask, axis=1, keepdims=True)                   # (TN, 1)
    alpha_g = jnp.sum(a * mask, axis=1, keepdims=True)               # (TN, 1)

    log_p = x_t - m - lse                        # log softmax_{target}
    probs = jnp.exp(log_p)                       # p_t
    d = 1.0 - probs

    # (1 - p)^gamma: repeated multiply for small integer gamma, pow otherwise.
    if float(gamma) == int(gamma) and 0 <= int(gamma) <= 8:
        mod = jnp.ones_like(d)
        for _ in range(int(gamma)):
            mod = mod * d
    else:
        mod = jnp.power(d, float(gamma))

    out_ref[...] = (-alpha_g * mod * log_p).astype(out_ref.dtype)


def focal_loss(inputs, targets, alpha, gamma=2):
    """inputs: (N, C) logits (any float dtype); targets: (N,) int; alpha: (C, 1).

    Returns per-sample loss (N, 1) float32 (no reduction, matching the module's
    forward()).
    """
    N, C = inputs.shape
    targets_2d = targets.reshape(N, 1).astype(jnp.int32)
    alpha_row = jnp.asarray(alpha, jnp.float32).reshape(1, C)

    # Tile the batch axis. Keep a double-buffered logits tile well under the
    # scoped-VMEM limit of every generation (v7x has only 64 MiB physical /
    # 32 MiB scoped default). Budget ~4 MiB per input buffer.
    row_bytes = C * jnp.dtype(inputs.dtype).itemsize
    budget = 4 * 1024 * 1024
    tile_n = max(8, min(512, (budget // max(row_bytes, 1)) // 8 * 8))

    if N <= tile_n:
        # Full-extent block is always a legal block shape.
        tile_n = N
        n_pad = N
    else:
        n_pad = pl.cdiv(N, tile_n) * tile_n

    if n_pad != N:
        # Pad rows with zero logits / target 0; padded losses are finite and
        # sliced off below.
        inputs = jnp.pad(inputs, ((0, n_pad - N), (0, 0)))
        targets_2d = jnp.pad(targets_2d, ((0, n_pad - N), (0, 0)))

    grid = (n_pad // tile_n,)
    kernel = functools.partial(_focal_loss_kernel, gamma=float(gamma))

    out = pl.pallas_call(
        kernel,
        out_shape=jax.ShapeDtypeStruct((n_pad, 1), jnp.float32),
        grid=grid,
        in_specs=[
            pl.BlockSpec((tile_n, C), lambda i: (i, 0)),   # logits tile
            pl.BlockSpec((tile_n, 1), lambda i: (i, 0)),   # targets tile
            pl.BlockSpec((1, C), lambda i: (0, 0)),        # alpha (grid-invariant)
        ],
        out_specs=pl.BlockSpec((tile_n, 1), lambda i: (i, 0)),
        compiler_params=pltpu.CompilerParams(
            dimension_semantics=("parallel",),
        ),
    )(inputs, targets_2d, alpha_row)

    return out[:N]


if __name__ == "__main__":
    key = jax.random.PRNGKey(0)
    k_in, k_tgt = jax.random.split(key)

    N, C = 8, 4
    inputs = jax.random.normal(k_in, (N, C), dtype=jnp.float32)
    targets = jax.random.randint(k_tgt, (N,), 0, C, dtype=jnp.int32)
    # deterministic parameter init, mirroring torch.ones(class_num, 1)
    alpha = jnp.ones((C, 1), dtype=jnp.float32)

    out = focal_loss(inputs, targets, alpha, gamma=2)
    out = jax.block_until_ready(out)

    # reference check in plain JAX
    p_ref = jax.nn.softmax(inputs, axis=1)
    probs_ref = jnp.take_along_axis(p_ref, targets[:, None], axis=1)
    alpha_ref = alpha[targets.reshape(-1)]
    loss_ref = -alpha_ref * (1.0 - probs_ref) ** 2 * jnp.log(probs_ref)
    assert out.shape == (N, 1)
    assert jnp.allclose(out, loss_ref, atol=1e-5, rtol=1e-5)

    print("KERNEL_OK")
</pallas_src>

<mosaic_0001>
module attributes {stable_mosaic.version = 11 : i64} {
  func.func @_focal_loss_kernel(%arg0: i32, %arg1: memref<8x4xf32, #tpu.memory_space<vmem>>, %arg2: memref<8x1xi32, #tpu.memory_space<vmem>>, %arg3: memref<1x4xf32, #tpu.memory_space<vmem>>, %arg4: memref<8x1xf32, #tpu.memory_space<vmem>>) attributes {dimension_semantics = [#tpu.dimension_semantics<parallel>], iteration_bounds = array<i64: 1>, scalar_prefetch = 0 : i64, scratch_operands = 0 : i64, tpu.core_type = #tpu.core_type<tc>, window_params = [{transform_indices = @transform_0, window_bounds = array<i64: 8, 4>}, {transform_indices = @transform_1, window_bounds = array<i64: 8, 1>}, {pipeline_mode = #tpu.pipeline_mode<synchronous>, transform_indices = @transform_2, window_bounds = array<i64: 1, 4>}, {transform_indices = @transform_3, window_bounds = array<i64: 8, 1>}]} {
    %c0 = arith.constant 0 : index
    %c0_0 = arith.constant 0 : index
    %0 = vector.load %arg1[%c0, %c0_0] : memref<8x4xf32, #tpu.memory_space<vmem>>, vector<8x4xf32>
    %c0_1 = arith.constant 0 : index
    %c0_2 = arith.constant 0 : index
    %1 = vector.load %arg2[%c0_1, %c0_2] : memref<8x1xi32, #tpu.memory_space<vmem>>, vector<8x1xi32>
    %c0_3 = arith.constant 0 : index
    %c0_4 = arith.constant 0 : index
    %2 = vector.load %arg3[%c0_3, %c0_4] : memref<1x4xf32, #tpu.memory_space<vmem>>, vector<1x4xf32>
    %3 = tpu.iota {dimensions = array<i32: 1>} : vector<8x4xi32>
    %4 = vector.broadcast %1 : vector<8x1xi32> to vector<8x4xi32>
    %5 = arith.cmpi eq, %3, %4 : vector<8x4xi32>
    %6 = arith.extui %5 : vector<8x4xi1> to vector<8x4xi32>
    %7 = arith.sitofp %6 : vector<8x4xi32> to vector<8x4xf32>
    %cst = arith.constant dense<0xFF800000> : vector<8xf32>
    %8 = vector.multi_reduction <maximumf>, %0, %cst [1] : vector<8x4xf32> to vector<8xf32>
    %9 = vector.shape_cast %8 : vector<8xf32> to vector<8x1xf32>
    %10 = vector.broadcast %9 : vector<8x1xf32> to vector<8x4xf32>
    %11 = arith.subf %0, %10 : vector<8x4xf32>
    %12 = math.exp %11 : vector<8x4xf32>
    %cst_5 = arith.constant dense<0.000000e+00> : vector<8xf32>
    %13 = vector.multi_reduction <add>, %12, %cst_5 [1] : vector<8x4xf32> to vector<8xf32>
    %14 = vector.shape_cast %13 : vector<8xf32> to vector<8x1xf32>
    %15 = math.log %14 : vector<8x1xf32>
    %16 = arith.mulf %0, %7 : vector<8x4xf32>
    %cst_6 = arith.constant dense<0.000000e+00> : vector<8xf32>
    %17 = vector.multi_reduction <add>, %16, %cst_6 [1] : vector<8x4xf32> to vector<8xf32>
    %18 = vector.shape_cast %17 : vector<8xf32> to vector<8x1xf32>
    %19 = vector.broadcast %2 : vector<1x4xf32> to vector<8x4xf32>
    %20 = arith.mulf %19, %7 : vector<8x4xf32>
    %cst_7 = arith.constant dense<0.000000e+00> : vector<8xf32>
    %21 = vector.multi_reduction <add>, %20, %cst_7 [1] : vector<8x4xf32> to vector<8xf32>
    %22 = vector.shape_cast %21 : vector<8xf32> to vector<8x1xf32>
    %23 = arith.subf %18, %9 : vector<8x1xf32>
    %24 = arith.subf %23, %15 : vector<8x1xf32>
    %25 = math.exp %24 : vector<8x1xf32>
    %cst_8 = arith.constant 1.000000e+00 : f32
    %26 = vector.broadcast %cst_8 : f32 to vector<8x1xf32>
    %27 = arith.subf %26, %25 : vector<8x1xf32>
    %cst_9 = arith.constant 1.000000e+00 : f32
    %28 = vector.broadcast %cst_9 : f32 to vector<8x1xf32>
    %29 = arith.mulf %28, %27 : vector<8x1xf32>
    %30 = arith.mulf %29, %27 : vector<8x1xf32>
    %cst_10 = arith.constant 0.000000e+00 : f32
    %31 = vector.broadcast %cst_10 : f32 to vector<8x1xf32>
    %32 = arith.subf %31, %22 : vector<8x1xf32>
    %33 = arith.mulf %32, %30 : vector<8x1xf32>
    %34 = arith.mulf %33, %24 : vector<8x1xf32>
    %c0_11 = arith.constant 0 : index
    %c0_12 = arith.constant 0 : index
    %35 = vector.load %arg4[%c0_11, %c0_12] : memref<8x1xf32, #tpu.memory_space<vmem>>, vector<8x1xf32>
    tpu.vector_store %arg4[%c0_11, %c0_12], %34 {strides = array<i32>} : memref<8x1xf32, #tpu.memory_space<vmem>>, vector<8x1xf32>,
    return
  }
  func.func @transform_0(%arg0: i32) -> (i32, i32) {
    %c0_i32 = arith.constant 0 : i32
    %c0_i32_0 = arith.constant 0 : i32
    return %arg0, %c0_i32 : i32, i32
  }
  func.func @transform_1(%arg0: i32) -> (i32, i32) {
    %c0_i32 = arith.constant 0 : i32
    %c0_i32_0 = arith.constant 0 : i32
    return %arg0, %c0_i32 : i32, i32
  }
  func.func @transform_2(%arg0: i32) -> (i32, i32) {
    %c0_i32 = arith.constant 0 : i32
    %c0_i32_0 = arith.constant 0 : i32
    %c0_i32_1 = arith.constant 0 : i32
    return %c0_i32, %c0_i32_0 : i32, i32
  }
  func.func @transform_3(%arg0: i32) -> (i32, i32) {
    %c0_i32 = arith.constant 0 : i32
    %c0_i32_0 = arith.constant 0 : i32
    return %arg0, %c0_i32 : i32, i32
  }
}

</mosaic_0001>

<bundles_post_ra>
// kernel: tpu_custom_call.1
= control target key start
LH: loop header
LB: loop body
LE: loop exit
PB: predicated region body
PF: predicated region fallthrough
CT: control target
= control target key end

     0   :  { %vm25_vm0 = vcmask 31744   ;;  %v77_v1 = vmov 0   ;;  %v17_v7 = vlaneseq  ;;  %v78_v10 = vmov 0.0   ;;  %s115_s0 = inlined_call_operand.vmem [shape: f32[8,4], index: 0, kind: input, shape index: {}]   ;;  %s116_s1 = inlined_call_operand.vmem [shape: s32[8,1], index: 1, kind: input, shape index: {}]   ;;  %s117_s2 = inlined_call_operand.vmem [shape: f32[1,4], index: 2, kind: input, shape index: {}]   ;;  %s118_s3 = inlined_call_operand.vmem [shape: f32[8,1], index: 3, kind: output, shape index: {}]  }
   0x1   :  { %v14_v0 = vld [vmem:[%s115_s0] sm:$0xff]  ;;  %70 = vset.pattern.permute.xlu0 %v77_v1  ;;  %vm60_vm2 = vcmask 7168  }
   0x2   :  { %v26_v2 = vsel %vm25_vm0, %v14_v0, -inf  ;;  %v15_v3 = vld [vmem:[%s116_s1] sm:$0xff]  ;;  %v18_v8 = vand.u32 127, %v17_v7 }
   0x3   :  { %27 = vmax.xlane.f32.xlu0 %v26_v2  ;;  %v67_v14 = vld [vmem:[%s117_s2] ss:$0 sm:$0xff] }
  0x19   :  { %20 = vperm.xlu0 %70, %v15_v3  }
  0x8c   :  { %v28_v4 = vpop.xlane.xlu0 %27 }
  0x8d   :  { %v29_v5 = vsub.f32 %v14_v0, %v28_v4 }
  0x8f   :  { %v30_v6 = vmul.f32 1.442695, %v29_v5 }
  0x91   :  { %71 = vpow2.f32 %v30_v6 }
  0x94   :  { %v21_v9 = vpop.permute.xlu0 %20 }
  0x95   :  { %vm22_vm1 = vcmp.eq.s32.totalorder %v18_v8, %v21_v9 }
  0x96   :  { %v66_v11 = vsel %vm22_vm1, 1.0, %v78_v10 }
  0x97   :  { %v37_v12 = vmul.f32 %v66_v11, %v14_v0  ;;  %v47_v17 = vmul.f32 %v67_v14, %v66_v11 }
  0x99   :  { %v38_v16 = vsel %vm25_vm0, %v37_v12, 0.0  ;;  %v48_v18 = vsel %vm25_vm0, %v47_v17, 0.0 }
  0x9e   :  { %v72_v13 = vpop.eup %71 }
  0x9f   :  { %v32_v15 = vsel %vm25_vm0, %v72_v13, 0.0 }
  0xa0   :  { %33 = vadd.xlane.f32.xlu1 %v32_v15 }
  0xa4   :  { %39 = vadd.xlane.f32.xlu1 %v38_v16 }
  0xa8   :  { %49 = vadd.xlane.f32.xlu1 %v48_v18 }
 0x129   :  { %v34_v19 = vpop.xlane.xlu1 %33 }
 0x12a   :  { %73 = vlog2.f32 %v34_v19 }
 0x12d   :  { %v40_v20 = vpop.xlane.xlu1 %39 }
 0x12e   :  { %v51_v23 = vsub.f32 %v40_v20, %v28_v4 }
 0x131   :  { %v50_v27 = vpop.xlane.xlu1 %49 }
 0x132   :  { %v57_v30 = vsub.f32 0.0, %v50_v27 }
 0x137   :  { %v74_v21 = vpop.eup %73 }
 0x138   :  { %v36_v22 = vmul.f32 0.6931472, %v74_v21 }
 0x13a   :  { %v52_v24 = vsub.f32 %v51_v23, %v36_v22 }
 0x13c   :  { %v53_v25 = vmul.f32 1.442695, %v52_v24 }
 0x13e   :  { %75 = vpow2.f32 %v53_v25 }
 0x14b   :  { %v76_v26 = vpop.eup %75 }
 0x14c   :  { %v55_v28 = vsub.f32 1.0, %v76_v26 }
 0x14e   :  { %v56_v29 = vmul.f32 %v55_v28, %v55_v28 }
 0x150   :  { %v58_v31 = vmul.f32 %v57_v30, %v56_v29 }
 0x152   :  { %v59_v32 = vmul.f32 %v58_v31, %v52_v24 }
 0x154   :  { %61 = vst.msk [vmem:[%s118_s3] sm:$0xff] %vm60_vm2, %v59_v32 }

</bundles_post_ra>
